<compile_context>
chip_gen: v6e
topology: v6e:2x2x1
jax: 0.10.0
libtpu: 0.0.40
codegen_flags: <defaults>
</compile_context>

<pallas_src>
from functools import partial

import jax
import jax.numpy as jnp
from jax.experimental import pallas as pl
from jax.experimental.pallas import tpu as pltpu

LANES = 128   # TPU vreg lane width; batch is folded onto the lane axis.
STRIP = 32    # rows per register-resident inner strip (4 f32 vregs per array)


def _round_up(a, m):
    return ((a + m - 1) // m) * m


def net_kernel(x_ref, w1_ref, b1_ref, w2_ref, b2_ref, o_ref):
    # x_ref / o_ref: (tm, 128) f32 in VMEM (lane-dense batch tile)
    # w1_ref, b1_ref, w2_ref: (20,) f32 in SMEM; b2_ref: (1,) f32 in SMEM
    hidden = w1_ref.shape[0]          # static (= 20)
    tm = x_ref.shape[0]               # static block rows

    def chain(x_strip):
        # Fully-unrolled per-element MLP on the VPU for one row strip.
        # acc starts at b2 (saves the final add).
        acc = jnp.full_like(x_strip, b2_ref[0])
        for j in range(hidden):
            h = jnp.maximum(w1_ref[j] * x_strip + b1_ref[j], 0.0)
            acc = acc + w2_ref[j] * h
        return acc

    n_full = tm // STRIP
    rem = tm - n_full * STRIP

    if n_full > 0:
        def body(s, carry):
            r0 = pl.multiple_of(s * STRIP, STRIP)
            xs = x_ref[pl.ds(r0, STRIP), :]
            o_ref[pl.ds(r0, STRIP), :] = chain(xs).astype(o_ref.dtype)
            return carry
        jax.lax.fori_loop(0, n_full, body, 0, unroll=min(4, n_full))

    if rem > 0:
        r0 = n_full * STRIP           # static offset (multiple of 8)
        xs = x_ref[pl.ds(r0, rem), :]
        o_ref[pl.ds(r0, rem), :] = chain(xs).astype(o_ref.dtype)


@partial(jax.jit, static_argnames=("max_block_rows",))
def net_forward(x, w1, b1, w2, b2, *, max_block_rows=4096):
    """Forward pass of `Net`.

    x:  (N, 1) float32 (as in the PyTorch module)
    w1: (20,)  hidden weights  (torch hidden.weight[:, 0])
    b1: (20,)  hidden bias
    w2: (20,)  predict weights (torch predict.weight[0, :])
    b2: (1,)   predict bias
    returns (N, 1) float32
    """
    N = x.shape[0]
    dtype = x.dtype

    # Fold the batch onto the 128-lane axis; rows always a multiple of 8 so
    # every (tm, 128) block obeys the (8, 128) tile rule.
    rows8 = _round_up(pl.cdiv(N, LANES), 8)

    if rows8 <= 16:
        num_blocks = 1                       # too small to split usefully
    else:
        # >= 2 parallel grid steps so v7x's two TensorCores both get work;
        # more steps only when a single block would exceed max_block_rows.
        num_blocks = max(pl.cdiv(rows8, max_block_rows), 2)

    tm = _round_up(pl.cdiv(rows8, num_blocks), 8)   # multiple of 8
    rows = num_blocks * tm                          # small over-padding only
    padded = rows * LANES

    x_flat = jnp.reshape(x, (-1,))
    if padded != N:
        x_flat = jnp.pad(x_flat, (0, padded - N))
    x2d = x_flat.reshape(rows, LANES)

    smem_spec = pl.BlockSpec(memory_space=pltpu.MemorySpace.SMEM)

    out2d = pl.pallas_call(
        net_kernel,
        out_shape=jax.ShapeDtypeStruct((rows, LANES), dtype),
        grid_spec=pltpu.PrefetchScalarGridSpec(
            num_scalar_prefetch=0,
            grid=(num_blocks,),
            in_specs=[
                pl.BlockSpec((tm, LANES), lambda i: (i, 0)),  # x tile (VMEM)
                smem_spec,                                    # w1 (20,) SMEM
                smem_spec,                                    # b1 (20,) SMEM
                smem_spec,                                    # w2 (20,) SMEM
                smem_spec,                                    # b2 (1,)  SMEM
            ],
            out_specs=pl.BlockSpec((tm, LANES), lambda i: (i, 0)),
        ),
        compiler_params=pltpu.CompilerParams(
            dimension_semantics=("parallel",),
        ),
        cost_estimate=pl.CostEstimate(
            flops=100 * padded,            # ~5 VPU ops per hidden unit
            transcendentals=0,
            bytes_accessed=8 * padded,     # read x + write y (f32)
        ),
    )(x2d, w1, b1, w2, b2)

    return out2d.reshape(-1)[:N].reshape(N, 1)


def init_params(key, in_dim=1, hidden=20, out_dim=1, dtype=jnp.float32):
    """Deterministic init mimicking torch.nn.Linear's U(-1/sqrt(fan_in), +)."""
    k1, k2, k3, k4 = jax.random.split(key, 4)
    bound1 = 1.0 / jnp.sqrt(jnp.float32(in_dim))
    bound2 = 1.0 / jnp.sqrt(jnp.float32(hidden))
    # Stored as flat vectors (in_dim = out_dim = 1 so no layout ambiguity).
    w1 = jax.random.uniform(k1, (hidden,), dtype, -bound1, bound1)
    b1 = jax.random.uniform(k2, (hidden,), dtype, -bound1, bound1)
    w2 = jax.random.uniform(k3, (hidden,), dtype, -bound2, bound2)
    b2 = jax.random.uniform(k4, (out_dim,), dtype, -bound2, bound2)
    return w1, b1, w2, b2


def net_reference(x, w1, b1, w2, b2):
    # Pure-JAX reference of the PyTorch forward pass.
    h = jnp.maximum(x @ w1.reshape(1, -1) + b1.reshape(1, -1), 0.0)
    return h @ w2.reshape(-1, 1) + b2.reshape(1, -1)


if __name__ == "__main__":
    key = jax.random.PRNGKey(0)
    pkey, _ = jax.random.split(key)

    w1, b1, w2, b2 = init_params(pkey)

    # Same input as the original script: torch.unsqueeze(linspace(-1,1,1000), 1)
    N = 1000
    x = jnp.linspace(-1.0, 1.0, N, dtype=jnp.float32).reshape(N, 1)

    out = jax.block_until_ready(net_forward(x, w1, b1, w2, b2))
    ref = net_reference(x, w1, b1, w2, b2)
    assert out.shape == (N, 1)
    assert jnp.allclose(out, ref, atol=1e-5, rtol=1e-5), "mismatch vs reference (N=1000)"

    # Larger batch: exercises the multi-block grid + inner strip loop paths.
    N2 = 100_000
    x2 = jnp.linspace(-1.0, 1.0, N2, dtype=jnp.float32).reshape(N2, 1)
    out2 = jax.block_until_ready(net_forward(x2, w1, b1, w2, b2))
    ref2 = net_reference(x2, w1, b1, w2, b2)
    assert out2.shape == (N2, 1)
    assert jnp.allclose(out2, ref2, atol=1e-5, rtol=1e-5), "mismatch vs reference (N=100000)"

    print("KERNEL_OK")
</pallas_src>

<mosaic_0001>
module attributes {stable_mosaic.version = 11 : i64} {
  func.func @net_kernel(%arg0: i32, %arg1: memref<8x128xf32, #tpu.memory_space<vmem>>, %arg2: memref<20xf32, #tpu.memory_space<smem>>, %arg3: memref<20xf32, #tpu.memory_space<smem>>, %arg4: memref<20xf32, #tpu.memory_space<smem>>, %arg5: memref<1xf32, #tpu.memory_space<smem>>, %arg6: memref<8x128xf32, #tpu.memory_space<vmem>>) attributes {dimension_semantics = [#tpu.dimension_semantics<parallel>], iteration_bounds = array<i64: 1>, scalar_prefetch = 0 : i64, scratch_operands = 0 : i64, tpu.core_type = #tpu.core_type<tc>, window_params = [{transform_indices = @transform_0, window_bounds = array<i64: 8, 128>}, {transform_indices = @transform_1, window_bounds = array<i64: 20>}, {transform_indices = @transform_2, window_bounds = array<i64: 20>}, {transform_indices = @transform_3, window_bounds = array<i64: 20>}, {transform_indices = @transform_4, window_bounds = array<i64: 1>}, {transform_indices = @transform_5, window_bounds = array<i64: 8, 128>}]} {
    %c0 = arith.constant 0 : index
    %c0_0 = arith.constant 0 : index
    %0 = vector.load %arg1[%c0, %c0_0] : memref<8x128xf32, #tpu.memory_space<vmem>>, vector<8x128xf32>
    %c0_1 = arith.constant 0 : index
    %1 = memref.load %arg5[%c0_1] : memref<1xf32, #tpu.memory_space<smem>>
    %2 = vector.broadcast %1 : f32 to vector<8x128xf32>
    %c0_2 = arith.constant 0 : index
    %3 = memref.load %arg2[%c0_2] : memref<20xf32, #tpu.memory_space<smem>>
    %4 = vector.broadcast %3 : f32 to vector<8x128xf32>
    %5 = arith.mulf %4, %0 : vector<8x128xf32>
    %c0_3 = arith.constant 0 : index
    %6 = memref.load %arg3[%c0_3] : memref<20xf32, #tpu.memory_space<smem>>
    %7 = vector.broadcast %6 : f32 to vector<8x128xf32>
    %8 = arith.addf %5, %7 : vector<8x128xf32>
    %cst = arith.constant 0.000000e+00 : f32
    %9 = vector.broadcast %cst : f32 to vector<8x128xf32>
    %10 = arith.maximumf %8, %9 : vector<8x128xf32>
    %c0_4 = arith.constant 0 : index
    %11 = memref.load %arg4[%c0_4] : memref<20xf32, #tpu.memory_space<smem>>
    %12 = vector.broadcast %11 : f32 to vector<8x128xf32>
    %13 = arith.mulf %12, %10 : vector<8x128xf32>
    %14 = arith.addf %2, %13 : vector<8x128xf32>
    %c1 = arith.constant 1 : index
    %15 = memref.load %arg2[%c1] : memref<20xf32, #tpu.memory_space<smem>>
    %16 = vector.broadcast %15 : f32 to vector<8x128xf32>
    %17 = arith.mulf %16, %0 : vector<8x128xf32>
    %c1_5 = arith.constant 1 : index
    %18 = memref.load %arg3[%c1_5] : memref<20xf32, #tpu.memory_space<smem>>
    %19 = vector.broadcast %18 : f32 to vector<8x128xf32>
    %20 = arith.addf %17, %19 : vector<8x128xf32>
    %cst_6 = arith.constant 0.000000e+00 : f32
    %21 = vector.broadcast %cst_6 : f32 to vector<8x128xf32>
    %22 = arith.maximumf %20, %21 : vector<8x128xf32>
    %c1_7 = arith.constant 1 : index
    %23 = memref.load %arg4[%c1_7] : memref<20xf32, #tpu.memory_space<smem>>
    %24 = vector.broadcast %23 : f32 to vector<8x128xf32>
    %25 = arith.mulf %24, %22 : vector<8x128xf32>
    %26 = arith.addf %14, %25 : vector<8x128xf32>
    %c2 = arith.constant 2 : index
    %27 = memref.load %arg2[%c2] : memref<20xf32, #tpu.memory_space<smem>>
    %28 = vector.broadcast %27 : f32 to vector<8x128xf32>
    %29 = arith.mulf %28, %0 : vector<8x128xf32>
    %c2_8 = arith.constant 2 : index
    %30 = memref.load %arg3[%c2_8] : memref<20xf32, #tpu.memory_space<smem>>
    %31 = vector.broadcast %30 : f32 to vector<8x128xf32>
    %32 = arith.addf %29, %31 : vector<8x128xf32>
    %cst_9 = arith.constant 0.000000e+00 : f32
    %33 = vector.broadcast %cst_9 : f32 to vector<8x128xf32>
    %34 = arith.maximumf %32, %33 : vector<8x128xf32>
    %c2_10 = arith.constant 2 : index
    %35 = memref.load %arg4[%c2_10] : memref<20xf32, #tpu.memory_space<smem>>
    %36 = vector.broadcast %35 : f32 to vector<8x128xf32>
    %37 = arith.mulf %36, %34 : vector<8x128xf32>
    %38 = arith.addf %26, %37 : vector<8x128xf32>
    %c3 = arith.constant 3 : index
    %39 = memref.load %arg2[%c3] : memref<20xf32, #tpu.memory_space<smem>>
    %40 = vector.broadcast %39 : f32 to vector<8x128xf32>
    %41 = arith.mulf %40, %0 : vector<8x128xf32>
    %c3_11 = arith.constant 3 : index
    %42 = memref.load %arg3[%c3_11] : memref<20xf32, #tpu.memory_space<smem>>
    %43 = vector.broadcast %42 : f32 to vector<8x128xf32>
    %44 = arith.addf %41, %43 : vector<8x128xf32>
    %cst_12 = arith.constant 0.000000e+00 : f32
    %45 = vector.broadcast %cst_12 : f32 to vector<8x128xf32>
    %46 = arith.maximumf %44, %45 : vector<8x128xf32>
    %c3_13 = arith.constant 3 : index
    %47 = memref.load %arg4[%c3_13] : memref<20xf32, #tpu.memory_space<smem>>
    %48 = vector.broadcast %47 : f32 to vector<8x128xf32>
    %49 = arith.mulf %48, %46 : vector<8x128xf32>
    %50 = arith.addf %38, %49 : vector<8x128xf32>
    %c4 = arith.constant 4 : index
    %51 = memref.load %arg2[%c4] : memref<20xf32, #tpu.memory_space<smem>>
    %52 = vector.broadcast %51 : f32 to vector<8x128xf32>
    %53 = arith.mulf %52, %0 : vector<8x128xf32>
    %c4_14 = arith.constant 4 : index
    %54 = memref.load %arg3[%c4_14] : memref<20xf32, #tpu.memory_space<smem>>
    %55 = vector.broadcast %54 : f32 to vector<8x128xf32>
    %56 = arith.addf %53, %55 : vector<8x128xf32>
    %cst_15 = arith.constant 0.000000e+00 : f32
    %57 = vector.broadcast %cst_15 : f32 to vector<8x128xf32>
    %58 = arith.maximumf %56, %57 : vector<8x128xf32>
    %c4_16 = arith.constant 4 : index
    %59 = memref.load %arg4[%c4_16] : memref<20xf32, #tpu.memory_space<smem>>
    %60 = vector.broadcast %59 : f32 to vector<8x128xf32>
    %61 = arith.mulf %60, %58 : vector<8x128xf32>
    %62 = arith.addf %50, %61 : vector<8x128xf32>
    %c5 = arith.constant 5 : index
    %63 = memref.load %arg2[%c5] : memref<20xf32, #tpu.memory_space<smem>>
    %64 = vector.broadcast %63 : f32 to vector<8x128xf32>
    %65 = arith.mulf %64, %0 : vector<8x128xf32>
    %c5_17 = arith.constant 5 : index
    %66 = memref.load %arg3[%c5_17] : memref<20xf32, #tpu.memory_space<smem>>
    %67 = vector.broadcast %66 : f32 to vector<8x128xf32>
    %68 = arith.addf %65, %67 : vector<8x128xf32>
    %cst_18 = arith.constant 0.000000e+00 : f32
    %69 = vector.broadcast %cst_18 : f32 to vector<8x128xf32>
    %70 = arith.maximumf %68, %69 : vector<8x128xf32>
    %c5_19 = arith.constant 5 : index
    %71 = memref.load %arg4[%c5_19] : memref<20xf32, #tpu.memory_space<smem>>
    %72 = vector.broadcast %71 : f32 to vector<8x128xf32>
    %73 = arith.mulf %72, %70 : vector<8x128xf32>
    %74 = arith.addf %62, %73 : vector<8x128xf32>
    %c6 = arith.constant 6 : index
    %75 = memref.load %arg2[%c6] : memref<20xf32, #tpu.memory_space<smem>>
    %76 = vector.broadcast %75 : f32 to vector<8x128xf32>
    %77 = arith.mulf %76, %0 : vector<8x128xf32>
    %c6_20 = arith.constant 6 : index
    %78 = memref.load %arg3[%c6_20] : memref<20xf32, #tpu.memory_space<smem>>
    %79 = vector.broadcast %78 : f32 to vector<8x128xf32>
    %80 = arith.addf %77, %79 : vector<8x128xf32>
    %cst_21 = arith.constant 0.000000e+00 : f32
    %81 = vector.broadcast %cst_21 : f32 to vector<8x128xf32>
    %82 = arith.maximumf %80, %81 : vector<8x128xf32>
    %c6_22 = arith.constant 6 : index
    %83 = memref.load %arg4[%c6_22] : memref<20xf32, #tpu.memory_space<smem>>
    %84 = vector.broadcast %83 : f32 to vector<8x128xf32>
    %85 = arith.mulf %84, %82 : vector<8x128xf32>
    %86 = arith.addf %74, %85 : vector<8x128xf32>
    %c7 = arith.constant 7 : index
    %87 = memref.load %arg2[%c7] : memref<20xf32, #tpu.memory_space<smem>>
    %88 = vector.broadcast %87 : f32 to vector<8x128xf32>
    %89 = arith.mulf %88, %0 : vector<8x128xf32>
    %c7_23 = arith.constant 7 : index
    %90 = memref.load %arg3[%c7_23] : memref<20xf32, #tpu.memory_space<smem>>
    %91 = vector.broadcast %90 : f32 to vector<8x128xf32>
    %92 = arith.addf %89, %91 : vector<8x128xf32>
    %cst_24 = arith.constant 0.000000e+00 : f32
    %93 = vector.broadcast %cst_24 : f32 to vector<8x128xf32>
    %94 = arith.maximumf %92, %93 : vector<8x128xf32>
    %c7_25 = arith.constant 7 : index
    %95 = memref.load %arg4[%c7_25] : memref<20xf32, #tpu.memory_space<smem>>
    %96 = vector.broadcast %95 : f32 to vector<8x128xf32>
    %97 = arith.mulf %96, %94 : vector<8x128xf32>
    %98 = arith.addf %86, %97 : vector<8x128xf32>
    %c8 = arith.constant 8 : index
    %99 = memref.load %arg2[%c8] : memref<20xf32, #tpu.memory_space<smem>>
    %100 = vector.broadcast %99 : f32 to vector<8x128xf32>
    %101 = arith.mulf %100, %0 : vector<8x128xf32>
    %c8_26 = arith.constant 8 : index
    %102 = memref.load %arg3[%c8_26] : memref<20xf32, #tpu.memory_space<smem>>
    %103 = vector.broadcast %102 : f32 to vector<8x128xf32>
    %104 = arith.addf %101, %103 : vector<8x128xf32>
    %cst_27 = arith.constant 0.000000e+00 : f32
    %105 = vector.broadcast %cst_27 : f32 to vector<8x128xf32>
    %106 = arith.maximumf %104, %105 : vector<8x128xf32>
    %c8_28 = arith.constant 8 : index
    %107 = memref.load %arg4[%c8_28] : memref<20xf32, #tpu.memory_space<smem>>
    %108 = vector.broadcast %107 : f32 to vector<8x128xf32>
    %109 = arith.mulf %108, %106 : vector<8x128xf32>
    %110 = arith.addf %98, %109 : vector<8x128xf32>
    %c9 = arith.constant 9 : index
    %111 = memref.load %arg2[%c9] : memref<20xf32, #tpu.memory_space<smem>>
    %112 = vector.broadcast %111 : f32 to vector<8x128xf32>
    %113 = arith.mulf %112, %0 : vector<8x128xf32>
    %c9_29 = arith.constant 9 : index
    %114 = memref.load %arg3[%c9_29] : memref<20xf32, #tpu.memory_space<smem>>
    %115 = vector.broadcast %114 : f32 to vector<8x128xf32>
    %116 = arith.addf %113, %115 : vector<8x128xf32>
    %cst_30 = arith.constant 0.000000e+00 : f32
    %117 = vector.broadcast %cst_30 : f32 to vector<8x128xf32>
    %118 = arith.maximumf %116, %117 : vector<8x128xf32>
    %c9_31 = arith.constant 9 : index
    %119 = memref.load %arg4[%c9_31] : memref<20xf32, #tpu.memory_space<smem>>
    %120 = vector.broadcast %119 : f32 to vector<8x128xf32>
    %121 = arith.mulf %120, %118 : vector<8x128xf32>
    %122 = arith.addf %110, %121 : vector<8x128xf32>
    %c10 = arith.constant 10 : index
    %123 = memref.load %arg2[%c10] : memref<20xf32, #tpu.memory_space<smem>>
    %124 = vector.broadcast %123 : f32 to vector<8x128xf32>
    %125 = arith.mulf %124, %0 : vector<8x128xf32>
    %c10_32 = arith.constant 10 : index
    %126 = memref.load %arg3[%c10_32] : memref<20xf32, #tpu.memory_space<smem>>
    %127 = vector.broadcast %126 : f32 to vector<8x128xf32>
    %128 = arith.addf %125, %127 : vector<8x128xf32>
    %cst_33 = arith.constant 0.000000e+00 : f32
    %129 = vector.broadcast %cst_33 : f32 to vector<8x128xf32>
    %130 = arith.maximumf %128, %129 : vector<8x128xf32>
    %c10_34 = arith.constant 10 : index
    %131 = memref.load %arg4[%c10_34] : memref<20xf32, #tpu.memory_space<smem>>
    %132 = vector.broadcast %131 : f32 to vector<8x128xf32>
    %133 = arith.mulf %132, %130 : vector<8x128xf32>
    %134 = arith.addf %122, %133 : vector<8x128xf32>
    %c11 = arith.constant 11 : index
    %135 = memref.load %arg2[%c11] : memref<20xf32, #tpu.memory_space<smem>>
    %136 = vector.broadcast %135 : f32 to vector<8x128xf32>
    %137 = arith.mulf %136, %0 : vector<8x128xf32>
    %c11_35 = arith.constant 11 : index
    %138 = memref.load %arg3[%c11_35] : memref<20xf32, #tpu.memory_space<smem>>
    %139 = vector.broadcast %138 : f32 to vector<8x128xf32>
    %140 = arith.addf %137, %139 : vector<8x128xf32>
    %cst_36 = arith.constant 0.000000e+00 : f32
    %141 = vector.broadcast %cst_36 : f32 to vector<8x128xf32>
    %142 = arith.maximumf %140, %141 : vector<8x128xf32>
    %c11_37 = arith.constant 11 : index
    %143 = memref.load %arg4[%c11_37] : memref<20xf32, #tpu.memory_space<smem>>
    %144 = vector.broadcast %143 : f32 to vector<8x128xf32>
    %145 = arith.mulf %144, %142 : vector<8x128xf32>
    %146 = arith.addf %134, %145 : vector<8x128xf32>
    %c12 = arith.constant 12 : index
    %147 = memref.load %arg2[%c12] : memref<20xf32, #tpu.memory_space<smem>>
    %148 = vector.broadcast %147 : f32 to vector<8x128xf32>
    %149 = arith.mulf %148, %0 : vector<8x128xf32>
    %c12_38 = arith.constant 12 : index
    %150 = memref.load %arg3[%c12_38] : memref<20xf32, #tpu.memory_space<smem>>
    %151 = vector.broadcast %150 : f32 to vector<8x128xf32>
    %152 = arith.addf %149, %151 : vector<8x128xf32>
    %cst_39 = arith.constant 0.000000e+00 : f32
    %153 = vector.broadcast %cst_39 : f32 to vector<8x128xf32>
    %154 = arith.maximumf %152, %153 : vector<8x128xf32>
    %c12_40 = arith.constant 12 : index
    %155 = memref.load %arg4[%c12_40] : memref<20xf32, #tpu.memory_space<smem>>
    %156 = vector.broadcast %155 : f32 to vector<8x128xf32>
    %157 = arith.mulf %156, %154 : vector<8x128xf32>
    %158 = arith.addf %146, %157 : vector<8x128xf32>
    %c13 = arith.constant 13 : index
    %159 = memref.load %arg2[%c13] : memref<20xf32, #tpu.memory_space<smem>>
    %160 = vector.broadcast %159 : f32 to vector<8x128xf32>
    %161 = arith.mulf %160, %0 : vector<8x128xf32>
    %c13_41 = arith.constant 13 : index
    %162 = memref.load %arg3[%c13_41] : memref<20xf32, #tpu.memory_space<smem>>
    %163 = vector.broadcast %162 : f32 to vector<8x128xf32>
    %164 = arith.addf %161, %163 : vector<8x128xf32>
    %cst_42 = arith.constant 0.000000e+00 : f32
    %165 = vector.broadcast %cst_42 : f32 to vector<8x128xf32>
    %166 = arith.maximumf %164, %165 : vector<8x128xf32>
    %c13_43 = arith.constant 13 : index
    %167 = memref.load %arg4[%c13_43] : memref<20xf32, #tpu.memory_space<smem>>
    %168 = vector.broadcast %167 : f32 to vector<8x128xf32>
    %169 = arith.mulf %168, %166 : vector<8x128xf32>
    %170 = arith.addf %158, %169 : vector<8x128xf32>
    %c14 = arith.constant 14 : index
    %171 = memref.load %arg2[%c14] : memref<20xf32, #tpu.memory_space<smem>>
    %172 = vector.broadcast %171 : f32 to vector<8x128xf32>
    %173 = arith.mulf %172, %0 : vector<8x128xf32>
    %c14_44 = arith.constant 14 : index
    %174 = memref.load %arg3[%c14_44] : memref<20xf32, #tpu.memory_space<smem>>
    %175 = vector.broadcast %174 : f32 to vector<8x128xf32>
    %176 = arith.addf %173, %175 : vector<8x128xf32>
    %cst_45 = arith.constant 0.000000e+00 : f32
    %177 = vector.broadcast %cst_45 : f32 to vector<8x128xf32>
    %178 = arith.maximumf %176, %177 : vector<8x128xf32>
    %c14_46 = arith.constant 14 : index
    %179 = memref.load %arg4[%c14_46] : memref<20xf32, #tpu.memory_space<smem>>
    %180 = vector.broadcast %179 : f32 to vector<8x128xf32>
    %181 = arith.mulf %180, %178 : vector<8x128xf32>
    %182 = arith.addf %170, %181 : vector<8x128xf32>
    %c15 = arith.constant 15 : index
    %183 = memref.load %arg2[%c15] : memref<20xf32, #tpu.memory_space<smem>>
    %184 = vector.broadcast %183 : f32 to vector<8x128xf32>
    %185 = arith.mulf %184, %0 : vector<8x128xf32>
    %c15_47 = arith.constant 15 : index
    %186 = memref.load %arg3[%c15_47] : memref<20xf32, #tpu.memory_space<smem>>
    %187 = vector.broadcast %186 : f32 to vector<8x128xf32>
    %188 = arith.addf %185, %187 : vector<8x128xf32>
    %cst_48 = arith.constant 0.000000e+00 : f32
    %189 = vector.broadcast %cst_48 : f32 to vector<8x128xf32>
    %190 = arith.maximumf %188, %189 : vector<8x128xf32>
    %c15_49 = arith.constant 15 : index
    %191 = memref.load %arg4[%c15_49] : memref<20xf32, #tpu.memory_space<smem>>
    %192 = vector.broadcast %191 : f32 to vector<8x128xf32>
    %193 = arith.mulf %192, %190 : vector<8x128xf32>
    %194 = arith.addf %182, %193 : vector<8x128xf32>
    %c16 = arith.constant 16 : index
    %195 = memref.load %arg2[%c16] : memref<20xf32, #tpu.memory_space<smem>>
    %196 = vector.broadcast %195 : f32 to vector<8x128xf32>
    %197 = arith.mulf %196, %0 : vector<8x128xf32>
    %c16_50 = arith.constant 16 : index
    %198 = memref.load %arg3[%c16_50] : memref<20xf32, #tpu.memory_space<smem>>
    %199 = vector.broadcast %198 : f32 to vector<8x128xf32>
    %200 = arith.addf %197, %199 : vector<8x128xf32>
    %cst_51 = arith.constant 0.000000e+00 : f32
    %201 = vector.broadcast %cst_51 : f32 to vector<8x128xf32>
    %202 = arith.maximumf %200, %201 : vector<8x128xf32>
    %c16_52 = arith.constant 16 : index
    %203 = memref.load %arg4[%c16_52] : memref<20xf32, #tpu.memory_space<smem>>
    %204 = vector.broadcast %203 : f32 to vector<8x128xf32>
    %205 = arith.mulf %204, %202 : vector<8x128xf32>
    %206 = arith.addf %194, %205 : vector<8x128xf32>
    %c17 = arith.constant 17 : index
    %207 = memref.load %arg2[%c17] : memref<20xf32, #tpu.memory_space<smem>>
    %208 = vector.broadcast %207 : f32 to vector<8x128xf32>
    %209 = arith.mulf %208, %0 : vector<8x128xf32>
    %c17_53 = arith.constant 17 : index
    %210 = memref.load %arg3[%c17_53] : memref<20xf32, #tpu.memory_space<smem>>
    %211 = vector.broadcast %210 : f32 to vector<8x128xf32>
    %212 = arith.addf %209, %211 : vector<8x128xf32>
    %cst_54 = arith.constant 0.000000e+00 : f32
    %213 = vector.broadcast %cst_54 : f32 to vector<8x128xf32>
    %214 = arith.maximumf %212, %213 : vector<8x128xf32>
    %c17_55 = arith.constant 17 : index
    %215 = memref.load %arg4[%c17_55] : memref<20xf32, #tpu.memory_space<smem>>
    %216 = vector.broadcast %215 : f32 to vector<8x128xf32>
    %217 = arith.mulf %216, %214 : vector<8x128xf32>
    %218 = arith.addf %206, %217 : vector<8x128xf32>
    %c18 = arith.constant 18 : index
    %219 = memref.load %arg2[%c18] : memref<20xf32, #tpu.memory_space<smem>>
    %220 = vector.broadcast %219 : f32 to vector<8x128xf32>
    %221 = arith.mulf %220, %0 : vector<8x128xf32>
    %c18_56 = arith.constant 18 : index
    %222 = memref.load %arg3[%c18_56] : memref<20xf32, #tpu.memory_space<smem>>
    %223 = vector.broadcast %222 : f32 to vector<8x128xf32>
    %224 = arith.addf %221, %223 : vector<8x128xf32>
    %cst_57 = arith.constant 0.000000e+00 : f32
    %225 = vector.broadcast %cst_57 : f32 to vector<8x128xf32>
    %226 = arith.maximumf %224, %225 : vector<8x128xf32>
    %c18_58 = arith.constant 18 : index
    %227 = memref.load %arg4[%c18_58] : memref<20xf32, #tpu.memory_space<smem>>
    %228 = vector.broadcast %227 : f32 to vector<8x128xf32>
    %229 = arith.mulf %228, %226 : vector<8x128xf32>
    %230 = arith.addf %218, %229 : vector<8x128xf32>
    %c19 = arith.constant 19 : index
    %231 = memref.load %arg2[%c19] : memref<20xf32, #tpu.memory_space<smem>>
    %232 = vector.broadcast %231 : f32 to vector<8x128xf32>
    %233 = arith.mulf %232, %0 : vector<8x128xf32>
    %c19_59 = arith.constant 19 : index
    %234 = memref.load %arg3[%c19_59] : memref<20xf32, #tpu.memory_space<smem>>
    %235 = vector.broadcast %234 : f32 to vector<8x128xf32>
    %236 = arith.addf %233, %235 : vector<8x128xf32>
    %cst_60 = arith.constant 0.000000e+00 : f32
    %237 = vector.broadcast %cst_60 : f32 to vector<8x128xf32>
    %238 = arith.maximumf %236, %237 : vector<8x128xf32>
    %c19_61 = arith.constant 19 : index
    %239 = memref.load %arg4[%c19_61] : memref<20xf32, #tpu.memory_space<smem>>
    %240 = vector.broadcast %239 : f32 to vector<8x128xf32>
    %241 = arith.mulf %240, %238 : vector<8x128xf32>
    %242 = arith.addf %230, %241 : vector<8x128xf32>
    %c0_62 = arith.constant 0 : index
    %c0_63 = arith.constant 0 : index
    %243 = vector.load %arg6[%c0_62, %c0_63] : memref<8x128xf32, #tpu.memory_space<vmem>>, vector<8x128xf32>
    tpu.vector_store %arg6[%c0_62, %c0_63], %242 {strides = array<i32>} : memref<8x128xf32, #tpu.memory_space<vmem>>, vector<8x128xf32>,
    return
  }
  func.func @transform_0(%arg0: i32) -> (i32, i32) {
    %c0_i32 = arith.constant 0 : i32
    %c0_i32_0 = arith.constant 0 : i32
    return %arg0, %c0_i32 : i32, i32
  }
  func.func @transform_1(%arg0: i32) -> i32 {
    %c0_i32 = arith.constant 0 : i32
    %c0_i32_0 = arith.constant 0 : i32
    return %c0_i32 : i32
  }
  func.func @transform_2(%arg0: i32) -> i32 {
    %c0_i32 = arith.constant 0 : i32
    %c0_i32_0 = arith.constant 0 : i32
    return %c0_i32 : i32
  }
  func.func @transform_3(%arg0: i32) -> i32 {
    %c0_i32 = arith.constant 0 : i32
    %c0_i32_0 = arith.constant 0 : i32
    return %c0_i32 : i32
  }
  func.func @transform_4(%arg0: i32) -> i32 {
    %c0_i32 = arith.constant 0 : i32
    %c0_i32_0 = arith.constant 0 : i32
    return %c0_i32 : i32
  }
  func.func @transform_5(%arg0: i32) -> (i32, i32) {
    %c0_i32 = arith.constant 0 : i32
    %c0_i32_0 = arith.constant 0 : i32
    return %arg0, %c0_i32 : i32, i32
  }
}

</mosaic_0001>

<bundles_post_ra>
// kernel: net_forward.1
= control target key start
LH: loop header
LB: loop body
LE: loop exit
PB: predicated region body
PF: predicated region fallthrough
CT: control target
= control target key end

     0   :  { %11 = vsyncpa [#allocation5], 0  ;;  %s546_s0 = inlined_call_operand.vmem [shape: f32[8,128], index: 0, kind: input, shape index: {}]   ;;  %s547_s1 = inlined_call_operand.vmem [shape: f32[20], index: 1, kind: input, shape index: {}]   ;;  %s548_s2 = inlined_call_operand.vmem [shape: f32[20], index: 2, kind: input, shape index: {}]   ;;  %s549_s3 = inlined_call_operand.vmem [shape: f32[20], index: 3, kind: input, shape index: {}]   ;;  %s550_s4 = inlined_call_operand.<no memory space> [shape: f32[1], index: 4, kind: input, shape index: {}]   ;;  %s551_s5 = inlined_call_operand.hbm [shape: f32[8,128], index: 5, kind: output, shape index: {}]  }
   0x1   :  { %12 = vsyncpa [#allocation7], 0  ;;  %s32_s20 = sshll.u32 %s548_s2, 4  ;;  %s33_s20 = int_to_ptr.vmem [resolvable:$true] %s32_s20 }
   0x2   :  { %13 = vsyncpa [#allocation4], 0  ;;  %s22_s23 = sshll.u32 %s547_s1, 4  ;;  %s359_s24 = scalar_lea.vmem %s33_s20, 16  ;;  %s23_s23 = int_to_ptr.vmem [resolvable:$true] %s22_s23 }
   0x3   :  { %p360_p0 = scmp.ne.s32.totalorder %s33_s20, %s359_s24  ;;  %p364_p1 = scmp.lt.s32.totalorder %s33_s20, %s33_s20 }
   0x4   :  { %p365_p2 = scmp.lt.s32.totalorder %s359_s24, %s359_s24 }
   0x6   :  { %p366_p3 = por %p365_p2, %p364_p1 }
   0x8   :  { %p367_p4 = pnand %p366_p3, %p360_p0 }
   0xa   :  { %370 = shalt.err (!%p367_p4)
}
   0xb   :  { %s421_s25 = smov [#allocation6]   ;;  %s371_s26 = scalar_lea.vmem %s23_s23, 16 }
   0xc   :  { %35 = dma.vmem_to_smem %s33_s20, 16, %s421_s25, [#allocation7]  }
   0xd   :  { %p372_p5 = scmp.ne.s32.totalorder %s23_s23, %s371_s26  ;;  %p376_p6 = scmp.lt.s32.totalorder %s23_s23, %s23_s23 }
   0xe   :  { %p377_p7 = scmp.lt.s32.totalorder %s371_s26, %s371_s26 }
  0x10   :  { %p378_p8 = por %p377_p7, %p376_p6 }
  0x12   :  { %p379_p9 = pnand %p378_p8, %p372_p5 }
  0x14   :  { %382 = shalt.err (!%p379_p9)
}
  0x15   :  { %s422_s2 = smov [#allocation3]   ;;  %s42_s28 = sshll.u32 %s549_s3, 4  ;;  %s43_s28 = int_to_ptr.vmem [resolvable:$true] %s42_s28 }
  0x16   :  { %25 = dma.vmem_to_smem %s23_s23, 16, %s422_s2, [#allocation5]  }
  0x17   :  { %s383_s29 = scalar_lea.vmem %s43_s28, 16  ;;  %p388_p11 = scmp.lt.s32.totalorder %s43_s28, %s43_s28 }
  0x18   :  { %p384_p10 = scmp.ne.s32.totalorder %s43_s28, %s383_s29  ;;  %p389_p12 = scmp.lt.s32.totalorder %s383_s29, %s383_s29 }
  0x1a   :  { %p390_p13 = por %p389_p12, %p388_p11 }
  0x1c   :  { %p391_p0 = pnand %p390_p13, %p384_p10 }
  0x1e   :  { %394 = shalt.err (!%p391_p0)
}
  0x1f   :  { %s423_s30 = smov [#allocation8]  }
  0x20   :  { %45 = dma.vmem_to_smem %s43_s28, 16, %s423_s30, [#allocation7]  }
  0x21   :  { %415 = dma.done.wait [#allocation5], 16  }
  0x22   :  { %416 = vsyncadd [#allocation5], 4294967280 }
  0x23   :  { %417 = dma.done.wait [#allocation7], 32  }
  0x24   :  { %418 = vsyncadd [#allocation7], 4294967264 }
  0x25   :  { %57 = sfence }
  0x26   :  { %s61_s6 = sld [smem:[#allocation3]]  ;;  %v467_v0 = vld [vmem:[%s546_s0] sm:$0xff]  ;;  %v60_v10 = vstv %s550_s4 }
  0x27   :  { %s64_s7 = sld [smem:[#allocation6]] }
  0x28   :  { %s68_s8 = sld [smem:[#allocation8]] }
  0x29   :  { %s298_s9 = sld [smem:[#allocation3 + $0x1]] }
  0x2a   :  { %s299_s11 = sld [smem:[#allocation6 + $0x1]] }
  0x2b   :  { %s469_s12 = sld [smem:[#allocation8 + $0x1]] }
  0x2c   :  { %v62_v1 = vstv %s61_s6  ;;  %s301_s13 = sld [smem:[#allocation3 + $0x2]] }
  0x2d   :  { %v63_v2 = vmul.f32 %v62_v1, %v467_v0  ;;  %v65_v3 = vstv %s64_s7  ;;  %s302_s14 = sld [smem:[#allocation6 + $0x2]] }
  0x2e   :  { %s472_s15 = sld [smem:[#allocation8 + $0x2]]  ;;  %v69_v6 = vstv %s68_s8 }
  0x2f   :  { %v66_v4 = vadd.f32 %v65_v3, %v63_v2  ;;  %v73_v5 = vstv %s298_s9  ;;  %s304_s16 = sld [smem:[#allocation3 + $0x3]] }
  0x30   :  { %v74_v7 = vmul.f32 %v73_v5, %v467_v0  ;;  %v76_v8 = vstv %s299_s11  ;;  %s305_s0 = sld [smem:[#allocation6 + $0x3]] }
  0x31   :  { %v67_v9 = vmax.f32 %v66_v4, 0.0  ;;  %s475_s17 = sld [smem:[#allocation8 + $0x3]]  ;;  %v80_v14 = vstv %s469_s12 }
  0x32   :  { %v77_v11 = vadd.f32 %v76_v8, %v74_v7  ;;  %v84_v12 = vstv %s301_s13  ;;  %s307_s20 = sld [smem:[#allocation3 + $0x4]] }
  0x33   :  { %v70_v13 = vmul.f32 %v69_v6, %v67_v9  ;;  %v85_v15 = vmul.f32 %v84_v12, %v467_v0  ;;  %v87_v16 = vstv %s302_s14  ;;  %s308_s21 = sld [smem:[#allocation6 + $0x4]] }
  0x34   :  { %v78_v17 = vmax.f32 %v77_v11, 0.0  ;;  %s482_s22 = sld [smem:[#allocation8 + $0x4]]  ;;  %v91_v22 = vstv %s472_s15 }
  0x35   :  { %v71_v18 = vadd.f32 %v70_v13, %v60_v10  ;;  %v88_v19 = vadd.f32 %v87_v16, %v85_v15  ;;  %v95_v20 = vstv %s304_s16  ;;  %s310_s23 = sld [smem:[#allocation3 + $0x5]] }
  0x36   :  { %v81_v21 = vmul.f32 %v80_v14, %v78_v17  ;;  %v96_v23 = vmul.f32 %v95_v20, %v467_v0  ;;  %v98_v24 = vstv %s305_s0  ;;  %s311_s4 = sld [smem:[#allocation6 + $0x5]] }
  0x37   :  { %v89_v25 = vmax.f32 %v88_v19, 0.0  ;;  %s486_s24 = sld [smem:[#allocation8 + $0x5]]  ;;  %v102_v30 = vstv %s475_s17 }
  0x38   :  { %v82_v26 = vadd.f32 %v81_v21, %v71_v18  ;;  %v99_v27 = vadd.f32 %v98_v24, %v96_v23  ;;  %v106_v28 = vstv %s307_s20  ;;  %s313_s25 = sld [smem:[#allocation3 + $0x6]] }
  0x39   :  { %v92_v29 = vmul.f32 %v91_v22, %v89_v25  ;;  %v107_v31 = vmul.f32 %v106_v28, %v467_v0  ;;  %v109_v32 = vstv %s308_s21  ;;  %s314_s26 = sld [smem:[#allocation6 + $0x6]] }
  0x3a   :  { %v100_v33 = vmax.f32 %v99_v27, 0.0  ;;  %s490_s2 = sld [smem:[#allocation8 + $0x6]]  ;;  %v113_v38 = vstv %s482_s22 }
  0x3b   :  { %v93_v34 = vadd.f32 %v92_v29, %v82_v26  ;;  %v110_v35 = vadd.f32 %v109_v32, %v107_v31  ;;  %v117_v36 = vstv %s310_s23  ;;  %s316_s1 = sld [smem:[#allocation3 + $0x7]] }
  0x3c   :  { %v103_v37 = vmul.f32 %v102_v30, %v100_v33  ;;  %v118_v39 = vmul.f32 %v117_v36, %v467_v0  ;;  %v120_v40 = vstv %s311_s4  ;;  %s317_s27 = sld [smem:[#allocation6 + $0x7]] }
  0x3d   :  { %v111_v41 = vmax.f32 %v110_v35, 0.0  ;;  %s494_s28 = sld [smem:[#allocation8 + $0x7]]  ;;  %v124_v46 = vstv %s486_s24 }
  0x3e   :  { %v104_v42 = vadd.f32 %v103_v37, %v93_v34  ;;  %v121_v43 = vadd.f32 %v120_v40, %v118_v39  ;;  %v128_v44 = vstv %s313_s25  ;;  %s319_s29 = sld [smem:[#allocation3 + $0x8]] }
  0x3f   :  { %v114_v45 = vmul.f32 %v113_v38, %v111_v41  ;;  %v129_v47 = vmul.f32 %v128_v44, %v467_v0  ;;  %v131_v48 = vstv %s314_s26  ;;  %s320_s30 = sld [smem:[#allocation6 + $0x8]] }
  0x40   :  { %v122_v49 = vmax.f32 %v121_v43, 0.0  ;;  %s498_s6 = sld [smem:[#allocation8 + $0x8]]  ;;  %v135_v54 = vstv %s490_s2 }
  0x41   :  { %v115_v50 = vadd.f32 %v114_v45, %v104_v42  ;;  %v132_v51 = vadd.f32 %v131_v48, %v129_v47  ;;  %v139_v52 = vstv %s316_s1  ;;  %s322_s7 = sld [smem:[#allocation3 + $0x9]] }
  0x42   :  { %v125_v53 = vmul.f32 %v124_v46, %v122_v49  ;;  %v140_v55 = vmul.f32 %v139_v52, %v467_v0  ;;  %v142_v56 = vstv %s317_s27  ;;  %s323_s8 = sld [smem:[#allocation6 + $0x9]] }
  0x43   :  { %v133_v57 = vmax.f32 %v132_v51, 0.0  ;;  %s502_s9 = sld [smem:[#allocation8 + $0x9]]  ;;  %v146_v62 = vstv %s494_s28 }
  0x44   :  { %v126_v58 = vadd.f32 %v125_v53, %v115_v50  ;;  %v143_v59 = vadd.f32 %v142_v56, %v140_v55  ;;  %v150_v60 = vstv %s319_s29  ;;  %s325_s3 = sld [smem:[#allocation3 + $0xa]] }
  0x45   :  { %v136_v61 = vmul.f32 %v135_v54, %v133_v57  ;;  %v151_v63 = vmul.f32 %v150_v60, %v467_v0  ;;  %v153_v1 = vstv %s320_s30  ;;  %s326_s10 = sld [smem:[#allocation6 + $0xa]] }
  0x46   :  { %v144_v2 = vmax.f32 %v143_v59, 0.0  ;;  %s506_s11 = sld [smem:[#allocation8 + $0xa]]  ;;  %v157_v7 = vstv %s498_s6 }
  0x47   :  { %v137_v3 = vadd.f32 %v136_v61, %v126_v58  ;;  %v154_v4 = vadd.f32 %v153_v1, %v151_v63  ;;  %v161_v5 = vstv %s322_s7  ;;  %s328_s12 = sld [smem:[#allocation3 + $0xb]] }
  0x48   :  { %v147_v6 = vmul.f32 %v146_v62, %v144_v2  ;;  %v162_v8 = vmul.f32 %v161_v5, %v467_v0  ;;  %v164_v9 = vstv %s323_s8  ;;  %s329_s13 = sld [smem:[#allocation6 + $0xb]] }
  0x49   :  { %v155_v10 = vmax.f32 %v154_v4, 0.0  ;;  %s510_s14 = sld [smem:[#allocation8 + $0xb]]  ;;  %v168_v15 = vstv %s502_s9 }
  0x4a   :  { %v148_v11 = vadd.f32 %v147_v6, %v137_v3  ;;  %v165_v12 = vadd.f32 %v164_v9, %v162_v8  ;;  %v172_v13 = vstv %s325_s3  ;;  %s331_s15 = sld [smem:[#allocation3 + $0xc]]  ;;  %s424_s3 = smov [#allocation9]  }
  0x4b   :  { %v158_v14 = vmul.f32 %v157_v7, %v155_v10  ;;  %v173_v16 = vmul.f32 %v172_v13, %v467_v0  ;;  %v175_v17 = vstv %s326_s10  ;;  %s332_s16 = sld [smem:[#allocation6 + $0xc]]  ;;  %s288_s10 = sshll.u32 %s424_s3, 4  ;;  %s289_s10 = int_to_ptr.vmem [resolvable:$true] %s288_s10 }
  0x4c   :  { %v166_v18 = vmax.f32 %v165_v12, 0.0  ;;  %s514_s0 = sld [smem:[#allocation8 + $0xc]]  ;;  %v179_v23 = vstv %s506_s11  ;;  %s395_s11 = scalar_lea.vmem %s289_s10, 128 }
  0x4d   :  { %v159_v19 = vadd.f32 %v158_v14, %v148_v11  ;;  %v176_v20 = vadd.f32 %v175_v17, %v173_v16  ;;  %v183_v21 = vstv %s328_s12  ;;  %s334_s17 = sld [smem:[#allocation3 + $0xd]]  ;;  %p396_p1 = scmp.ne.s32.totalorder %s289_s10, %s395_s11 }
  0x4e   :  { %v169_v22 = vmul.f32 %v168_v15, %v166_v18  ;;  %v184_v24 = vmul.f32 %v183_v21, %v467_v0  ;;  %v186_v25 = vstv %s329_s13  ;;  %s335_s18 = sld [smem:[#allocation6 + $0xd]]  ;;  %p400_p2 = scmp.lt.s32.totalorder %s289_s10, %s289_s10 }
  0x4f   :  { %v177_v26 = vmax.f32 %v176_v20, 0.0  ;;  %s518_s19 = sld [smem:[#allocation8 + $0xd]]  ;;  %v190_v31 = vstv %s510_s14  ;;  %p401_p3 = scmp.lt.s32.totalorder %s395_s11, %s395_s11 }
  0x50   :  { %v170_v27 = vadd.f32 %v169_v22, %v159_v19  ;;  %v187_v28 = vadd.f32 %v186_v25, %v184_v24  ;;  %v194_v29 = vstv %s331_s15  ;;  %s337_s20 = sld [smem:[#allocation3 + $0xe]] }
  0x51   :  { %v180_v30 = vmul.f32 %v179_v23, %v177_v26  ;;  %v195_v32 = vmul.f32 %v194_v29, %v467_v0  ;;  %v197_v33 = vstv %s332_s16  ;;  %s338_s21 = sld [smem:[#allocation6 + $0xe]]  ;;  %p402_p4 = por %p401_p3, %p400_p2 }
  0x52   :  { %v188_v34 = vmax.f32 %v187_v28, 0.0  ;;  %s522_s22 = sld [smem:[#allocation8 + $0xe]]  ;;  %v201_v39 = vstv %s514_s0 }
  0x53   :  { %v181_v35 = vadd.f32 %v180_v30, %v170_v27  ;;  %v198_v36 = vadd.f32 %v197_v33, %v195_v32  ;;  %v205_v37 = vstv %s334_s17  ;;  %s340_s23 = sld [smem:[#allocation3 + $0xf]]  ;;  %p403_p5 = pnand %p402_p4, %p396_p1 }
  0x54   :  { %v191_v38 = vmul.f32 %v190_v31, %v188_v34  ;;  %v206_v40 = vmul.f32 %v205_v37, %v467_v0  ;;  %v208_v41 = vstv %s335_s18  ;;  %s341_s4 = sld [smem:[#allocation6 + $0xf]] }
  0x55   :  { %v199_v42 = vmax.f32 %v198_v36, 0.0  ;;  %s526_s24 = sld [smem:[#allocation8 + $0xf]]  ;;  %v212_v47 = vstv %s518_s19 }
  0x56   :  { %v192_v43 = vadd.f32 %v191_v38, %v181_v35  ;;  %v209_v44 = vadd.f32 %v208_v41, %v206_v40  ;;  %v216_v45 = vstv %s337_s20  ;;  %s343_s25 = sld [smem:[#allocation3 + $0x10]] }
  0x57   :  { %v202_v46 = vmul.f32 %v201_v39, %v199_v42  ;;  %v217_v48 = vmul.f32 %v216_v45, %v467_v0  ;;  %v219_v49 = vstv %s338_s21  ;;  %s344_s26 = sld [smem:[#allocation6 + $0x10]] }
  0x58   :  { %v210_v50 = vmax.f32 %v209_v44, 0.0  ;;  %s530_s2 = sld [smem:[#allocation8 + $0x10]]  ;;  %v223_v55 = vstv %s522_s22 }
  0x59   :  { %v203_v51 = vadd.f32 %v202_v46, %v192_v43  ;;  %v220_v52 = vadd.f32 %v219_v49, %v217_v48  ;;  %v227_v53 = vstv %s340_s23  ;;  %s346_s1 = sld [smem:[#allocation3 + $0x11]] }
  0x5a   :  { %v213_v54 = vmul.f32 %v212_v47, %v210_v50  ;;  %v228_v56 = vmul.f32 %v227_v53, %v467_v0  ;;  %v230_v57 = vstv %s341_s4  ;;  %s347_s27 = sld [smem:[#allocation6 + $0x11]] }
  0x5b   :  { %v221_v58 = vmax.f32 %v220_v52, 0.0  ;;  %s534_s28 = sld [smem:[#allocation8 + $0x11]]  ;;  %v234_v63 = vstv %s526_s24 }
  0x5c   :  { %v214_v59 = vadd.f32 %v213_v54, %v203_v51  ;;  %v231_v60 = vadd.f32 %v230_v57, %v228_v56  ;;  %v238_v61 = vstv %s343_s25  ;;  %s349_s29 = sld [smem:[#allocation3 + $0x12]] }
  0x5d   :  { %v224_v62 = vmul.f32 %v223_v55, %v221_v58  ;;  %v239_v1 = vmul.f32 %v238_v61, %v467_v0  ;;  %v241_v2 = vstv %s344_s26  ;;  %s350_s30 = sld [smem:[#allocation6 + $0x12]] }
  0x5e   :  { %v232_v3 = vmax.f32 %v231_v60, 0.0  ;;  %s351_s6 = sld [smem:[#allocation8 + $0x12]]  ;;  %v245_v8 = vstv %s530_s2 }
  0x5f   :  { %v225_v4 = vadd.f32 %v224_v62, %v214_v59  ;;  %v242_v5 = vadd.f32 %v241_v2, %v239_v1  ;;  %v249_v6 = vstv %s346_s1  ;;  %s352_s7 = sld [smem:[#allocation3 + $0x13]] }
  0x60   :  { %v235_v7 = vmul.f32 %v234_v63, %v232_v3  ;;  %v250_v9 = vmul.f32 %v249_v6, %v467_v0  ;;  %v252_v10 = vstv %s347_s27  ;;  %s353_s8 = sld [smem:[#allocation6 + $0x13]] }
  0x61   :  { %v243_v11 = vmax.f32 %v242_v5, 0.0  ;;  %s354_s9 = sld [smem:[#allocation8 + $0x13]]  ;;  %v256_v16 = vstv %s534_s28 }
  0x62   :  { %v236_v12 = vadd.f32 %v235_v7, %v225_v4  ;;  %v253_v13 = vadd.f32 %v252_v10, %v250_v9  ;;  %v260_v14 = vstv %s349_s29 }
  0x63   :  { %v246_v15 = vmul.f32 %v245_v8, %v243_v11  ;;  %v261_v17 = vmul.f32 %v260_v14, %v467_v0  ;;  %v263_v18 = vstv %s350_s30 }
  0x64   :  { %v254_v19 = vmax.f32 %v253_v13, 0.0  ;;  %v267_v24 = vstv %s351_s6 }
  0x65   :  { %v247_v20 = vadd.f32 %v246_v15, %v236_v12  ;;  %v264_v21 = vadd.f32 %v263_v18, %v261_v17  ;;  %v271_v22 = vstv %s352_s7 }
  0x66   :  { %v257_v23 = vmul.f32 %v256_v16, %v254_v19  ;;  %v272_v25 = vmul.f32 %v271_v22, %v467_v0  ;;  %v274_v26 = vstv %s353_s8 }
  0x67   :  { %v265_v27 = vmax.f32 %v264_v21, 0.0  ;;  %v278_v31 = vstv %s354_s9 }
  0x68   :  { %v258_v28 = vadd.f32 %v257_v23, %v247_v20  ;;  %v275_v29 = vadd.f32 %v274_v26, %v272_v25 }
  0x69   :  { %v268_v30 = vmul.f32 %v267_v24, %v265_v27 }
  0x6a   :  { %v276_v32 = vmax.f32 %v275_v29, 0.0 }
  0x6b   :  { %v269_v33 = vadd.f32 %v268_v30, %v258_v28 }
  0x6c   :  { %v279_v34 = vmul.f32 %v278_v31, %v276_v32 }
  0x6e   :  { %v280_v35 = vadd.f32 %v279_v34, %v269_v33 }
  0x70   :  { %281 = vst [vmem:[#allocation9] sm:$0xff] %v280_v35 }
  0x71   :  { %406 = shalt.err (!%p403_p5)
}
  0x72   :  { %291 = dma.vmem_to_hbm [thread:$0]  %s289_s10, 128, %s551_s5, [#allocation4]  }
  0x73   :  { %419 = dma.done.wait [#allocation4], 128  }
  0x74   :  { %420 = vsyncadd [#allocation4], 4294967168 }
  0x75   :  { %295 = vsyncpa [#allocation4], 1 }
  0x76   :  { %296 = vsyncpa [#allocation5], 1 }
  0x77   :  { %297 = vsyncpa [#allocation7], 1 }

</bundles_post_ra>
